<compile_context>
chip_gen: v5e
topology: v5e:2x2
jax: 0.10.0
libtpu: 0.0.40
codegen_flags: <defaults>
</compile_context>

<pallas_src>
import functools

import jax
import jax.numpy as jnp
from jax import lax
from jax.experimental import pallas as pl
from jax.experimental.pallas import tpu as pltpu

_SUB = 8                      # f32 sublane tile
_LANE = 128                   # lane tile
_GRAIN = _SUB * _LANE         # minimum padding grain (1024 elements)


def _logsumexp_loss_kernel(x_ref, o_ref, acc_ref, *, total_elems, block_rows):
    """Accumulate sum(softplus(x)) over the inner ('arbitrary') grid axis.

    Grid = (n_split, blocks_per_split).  Each split keeps a resident (8,128)
    f32 accumulator in VMEM and writes its partial sum once, at the last inner
    step.  Elements whose global flat index >= total_elems (tail padding or
    grid-padding blocks) are masked to zero.
    """
    p = pl.program_id(0)                 # parallel split index
    i = pl.program_id(1)                 # reduction step within this split
    n_inner = pl.num_programs(1)

    @pl.when(i == 0)
    def _():
        acc_ref[...] = jnp.zeros_like(acc_ref)

    # Global (un-clamped) linear block index -> global row offset of this tile.
    lin_block = p * n_inner + i
    row0 = lin_block * block_rows

    x = x_ref[...].astype(jnp.float32)
    # Numerically stable softplus == logsumexp([x, 0]):
    #   max(x, 0) + log(1 + exp(-|x|))
    # (log1p would be marginally more accurate for |x| >> 1; log is plenty
    #  for an averaged loss and is guaranteed to lower on all generations.)
    sp = jnp.maximum(x, 0.0) + jnp.log(1.0 + jnp.exp(-jnp.abs(x)))

    # Mask the ragged tail / grid-padding iterations.
    rows = lax.broadcasted_iota(jnp.int32, (block_rows, _LANE), 0)
    lanes = lax.broadcasted_iota(jnp.int32, (block_rows, _LANE), 1)
    gidx = (row0 + rows) * _LANE + lanes
    sp = jnp.where(gidx < total_elems, sp, 0.0)

    # Pure-VPU accumulation into one vreg-shaped accumulator.
    acc_ref[...] += jnp.sum(sp.reshape(block_rows // _SUB, _SUB, _LANE), axis=0)

    @pl.when(i == n_inner - 1)
    def _():
        o_ref[0, 0] = jnp.sum(acc_ref[...])


def logsumexp_loss(x, *, rows_per_block=4096, n_split=2):
    """Pallas implementation of LogSumExpLoss.forward(x) (return_mean=True).

    Returns a float32 scalar: mean(log(1 + exp(x))) over all elements.
    """
    # TODO(synk): return_mean=False (per-element logsumexp output, keepdim)
    # is not implemented in the kernel; only the default mean-reduced path is.
    x = jnp.asarray(x)
    total = x.size

    if x.ndim == 0:
        # torch.mean of a 0-d tensor is the value itself.
        return x.astype(jnp.float32)

    flat = x.reshape(-1)

    # Pad only the ragged tail up to the next (8*128) grain (<= 1023 elements);
    # padded values are masked out inside the kernel, so their content never
    # contributes to the sum.
    padded = pl.cdiv(total, _GRAIN) * _GRAIN
    if padded != total:
        flat = jnp.pad(flat, (0, padded - total))
    rows = padded // _LANE                       # multiple of 8
    x2d = flat.reshape(rows, _LANE)

    # Block rows: multiple of the dtype's sublane packing (8 for f32, 16 for
    # bf16, ...), or the full row count for small inputs.
    pack = _SUB * max(1, 4 // x.dtype.itemsize)
    rows_per_block = max(pack, (rows_per_block // pack) * pack)
    block_rows = min(rows_per_block, rows)
    n_blocks = pl.cdiv(rows, block_rows)

    # Leading "parallel" axis so v7x's two TensorCores each reduce half the
    # blocks into their own partial sum (sequential, harmless on v5e/v6e).
    n_split = max(1, min(n_split, n_blocks))
    blocks_per_split = pl.cdiv(n_blocks, n_split)

    def x_index_map(p_idx, i_idx):
        # Clamp so grid-padding iterations (when n_blocks doesn't divide
        # evenly) just re-read the last valid block; their contribution is
        # masked to zero inside the kernel.
        lin = p_idx * blocks_per_split + i_idx
        return (jnp.minimum(lin, n_blocks - 1), 0)

    kernel = functools.partial(
        _logsumexp_loss_kernel, total_elems=total, block_rows=block_rows)

    partials = pl.pallas_call(
        kernel,
        out_shape=jax.ShapeDtypeStruct((n_split, 1), jnp.float32),
        grid_spec=pltpu.PrefetchScalarGridSpec(
            num_scalar_prefetch=0,
            grid=(n_split, blocks_per_split),
            in_specs=[pl.BlockSpec((block_rows, _LANE), x_index_map)],
            out_specs=pl.BlockSpec(
                (1, 1), lambda p_idx, i_idx: (p_idx, 0),
                memory_space=pltpu.SMEM),
            scratch_shapes=[pltpu.VMEM((_SUB, _LANE), jnp.float32)],
        ),
        compiler_params=pltpu.CompilerParams(
            dimension_semantics=("parallel", "arbitrary"),
        ),
        cost_estimate=pl.CostEstimate(
            flops=6 * total,
            transcendentals=2 * total,
            bytes_accessed=padded * x.dtype.itemsize + 4 * n_split,
        ),
    )(x2d)

    return jnp.sum(partials) / jnp.float32(total)


def _reference(x):
    x = jnp.asarray(x)
    if x.ndim == 0:
        return x.astype(jnp.float32)
    # logsumexp([x_i, 0]) == logaddexp(x_i, 0); mean over all elements.
    return jnp.mean(jnp.logaddexp(x.astype(jnp.float32), 0.0))


if __name__ == "__main__":
    key = jax.random.PRNGKey(0)
    k1, k2, k3, k4 = jax.random.split(key, 4)

    tests = [
        # (N, 1) input, lane-aligned (no-pad path), single block.
        (jax.random.normal(k1, (2048, 1), dtype=jnp.float32), {}),
        # 1-D ragged input -> exercises the in-kernel tail masking.
        (jax.random.normal(k2, (1000,), dtype=jnp.float32), {}),
        # Small blocks forced: multi-step accumulation + 2-way parallel split
        # with an odd block count (exercises the index-map clamp path).
        (3.0 * jax.random.normal(k3, (3000,), dtype=jnp.float32),
         dict(rows_per_block=8, n_split=2)),
        # bf16 input streamed at half the HBM bytes, upcast in-kernel.
        (jax.random.normal(k4, (4096,), dtype=jnp.bfloat16), {}),
    ]

    for xin, kwargs in tests:
        got = jax.block_until_ready(logsumexp_loss(xin, **kwargs))
        want = jax.block_until_ready(_reference(xin))
        assert jnp.allclose(got, want, rtol=1e-5, atol=1e-5), (
            xin.shape, got, want)

    # 0-d input: torch returns mean(x) == x.
    x0 = jnp.float32(0.7)
    assert jnp.allclose(logsumexp_loss(x0), _reference(x0))

    print("KERNEL_OK")
</pallas_src>

<mosaic_0001>
module attributes {stable_mosaic.version = 11 : i64} {
  func.func @_logsumexp_loss_kernel(%arg0: i32, %arg1: i32, %arg2: memref<16x128xf32, #tpu.memory_space<vmem>>, %arg3: memref<1x1xf32, #tpu.memory_space<smem>>, %arg4: memref<8x128xf32, #tpu.memory_space<vmem>>) attributes {dimension_semantics = [#tpu.dimension_semantics<parallel>, #tpu.dimension_semantics<arbitrary>], iteration_bounds = array<i64: 1, 1>, scalar_prefetch = 0 : i64, scratch_operands = 1 : i64, tpu.core_type = #tpu.core_type<tc>, window_params = [{transform_indices = @transform_0, window_bounds = array<i64: 16, 128>}, {transform_indices = @transform_1, window_bounds = array<i64: 1, 1>}]} {
    %c0_i32 = arith.constant 0 : i32
    %0 = arith.cmpi eq, %arg1, %c0_i32 : i32
    %1 = arith.extui %0 : i1 to i32
    %c0_i32_0 = arith.constant 0 : i32
    %2 = arith.cmpi ne, %1, %c0_i32_0 : i32
    scf.if %2 {
      %cst_12 = arith.constant 0.000000e+00 : f32
      %36 = vector.broadcast %cst_12 : f32 to vector<8x128xf32>
      %c0_13 = arith.constant 0 : index
      %c0_14 = arith.constant 0 : index
      %37 = vector.load %arg4[%c0_13, %c0_14] : memref<8x128xf32, #tpu.memory_space<vmem>>, vector<8x128xf32>
      tpu.vector_store %arg4[%c0_13, %c0_14], %36 {strides = array<i32>} : memref<8x128xf32, #tpu.memory_space<vmem>>, vector<8x128xf32>,
    } else {
    }
    %c1_i32 = arith.constant 1 : i32
    %3 = arith.muli %arg0, %c1_i32 : i32
    %4 = arith.addi %3, %arg1 : i32
    %c16_i32 = arith.constant 16 : i32
    %5 = arith.muli %4, %c16_i32 : i32
    %c0 = arith.constant 0 : index
    %c0_1 = arith.constant 0 : index
    %6 = vector.load %arg2[%c0, %c0_1] : memref<16x128xf32, #tpu.memory_space<vmem>>, vector<16x128xf32>
    %cst = arith.constant 0.000000e+00 : f32
    %7 = vector.broadcast %cst : f32 to vector<16x128xf32>
    %8 = arith.maximumf %6, %7 : vector<16x128xf32>
    %9 = math.absf %6 : vector<16x128xf32>
    %cst_2 = arith.constant 0.000000e+00 : f32
    %10 = vector.broadcast %cst_2 : f32 to vector<16x128xf32>
    %11 = arith.subf %10, %9 : vector<16x128xf32>
    %12 = math.exp %11 : vector<16x128xf32>
    %cst_3 = arith.constant 1.000000e+00 : f32
    %13 = vector.broadcast %cst_3 : f32 to vector<16x128xf32>
    %14 = arith.addf %13, %12 : vector<16x128xf32>
    %15 = math.log %14 : vector<16x128xf32>
    %16 = arith.addf %8, %15 : vector<16x128xf32>
    %17 = tpu.iota {dimensions = array<i32: 0>} : vector<16x128xi32>
    %18 = tpu.iota {dimensions = array<i32: 1>} : vector<16x128xi32>
    %19 = vector.broadcast %5 : i32 to vector<16x128xi32>
    %20 = arith.addi %19, %17 : vector<16x128xi32>
    %c128_i32 = arith.constant 128 : i32
    %21 = vector.broadcast %c128_i32 : i32 to vector<16x128xi32>
    %22 = arith.muli %20, %21 : vector<16x128xi32>
    %23 = arith.addi %22, %18 : vector<16x128xi32>
    %c2048_i32 = arith.constant 2048 : i32
    %24 = vector.broadcast %c2048_i32 : i32 to vector<16x128xi32>
    %25 = arith.cmpi slt, %23, %24 : vector<16x128xi32>
    %cst_4 = arith.constant 0.000000e+00 : f32
    %26 = vector.broadcast %cst_4 : f32 to vector<16x128xf32>
    %27 = arith.select %25, %16, %26 : vector<16x128xi1>, vector<16x128xf32>
    %c0_5 = arith.constant 0 : index
    %c0_6 = arith.constant 0 : index
    %28 = vector.load %arg4[%c0_5, %c0_6] : memref<8x128xf32, #tpu.memory_space<vmem>>, vector<8x128xf32>
    %29 = vector.shape_cast %27 : vector<16x128xf32> to vector<2x8x128xf32>
    %cst_7 = arith.constant dense<0.000000e+00> : vector<8x128xf32>
    %30 = vector.multi_reduction <add>, %29, %cst_7 [0] : vector<2x8x128xf32> to vector<8x128xf32>
    %31 = arith.addf %28, %30 : vector<8x128xf32>
    %c0_8 = arith.constant 0 : index
    %c0_9 = arith.constant 0 : index
    %32 = vector.load %arg4[%c0_8, %c0_9] : memref<8x128xf32, #tpu.memory_space<vmem>>, vector<8x128xf32>
    tpu.vector_store %arg4[%c0_8, %c0_9], %31 {strides = array<i32>} : memref<8x128xf32, #tpu.memory_space<vmem>>, vector<8x128xf32>,
    %c0_i32_10 = arith.constant 0 : i32
    %33 = arith.cmpi eq, %arg1, %c0_i32_10 : i32
    %34 = arith.extui %33 : i1 to i32
    %c0_i32_11 = arith.constant 0 : i32
    %35 = arith.cmpi ne, %34, %c0_i32_11 : i32
    scf.if %35 {
      %c0_12 = arith.constant 0 : index
      %c0_13 = arith.constant 0 : index
      %36 = vector.load %arg4[%c0_12, %c0_13] : memref<8x128xf32, #tpu.memory_space<vmem>>, vector<8x128xf32>
      %37 = vector.shape_cast %36 : vector<8x128xf32> to vector<1x8x128xf32>
      %cst_14 = arith.constant dense<0.000000e+00> : vector<1xf32>
      %38 = vector.multi_reduction <add>, %37, %cst_14 [1, 2] : vector<1x8x128xf32> to vector<1xf32>
      %39 = vector.shape_cast %38 : vector<1xf32> to vector<1x1x1xf32>
      %40 = vector.extract %39[0, 0, 0] : f32 from vector<1x1x1xf32>
      %c0_15 = arith.constant 0 : index
      %c0_16 = arith.constant 0 : index
      %41 = memref.load %arg3[%c0_15, %c0_16] : memref<1x1xf32, #tpu.memory_space<smem>>
      memref.store %40, %arg3[%c0_15, %c0_16] : memref<1x1xf32, #tpu.memory_space<smem>>
    } else {
    }
    return
  }
  func.func @transform_0(%arg0: i32, %arg1: i32) -> (i32, i32) {
    %c1_i32 = arith.constant 1 : i32
    %0 = arith.muli %arg0, %c1_i32 : i32
    %1 = arith.addi %0, %arg1 : i32
    %c0_i32 = arith.constant 0 : i32
    %2 = arith.minsi %1, %c0_i32 : i32
    %c0_i32_0 = arith.constant 0 : i32
    %c0_i32_1 = arith.constant 0 : i32
    return %2, %c0_i32_0 : i32, i32
  }
  func.func @transform_1(%arg0: i32, %arg1: i32) -> (i32, i32) {
    %c0_i32 = arith.constant 0 : i32
    %c0_i32_0 = arith.constant 0 : i32
    return %arg0, %c0_i32 : i32, i32
  }
}

</mosaic_0001>

<bundles_post_ra>
// kernel: tpu_custom_call.1
= control target key start
LH: loop header
LB: loop body
LE: loop exit
PB: predicated region body
PF: predicated region fallthrough
CT: control target
= control target key end

     0   :  { %6 = vsyncpa [#allocation4], 0  ;;  %s189_s0 = inlined_call_operand.hbm [shape: f32[16,128], index: 0, kind: input, shape index: {}]   ;;  %s190_s1 = inlined_call_operand.hbm [shape: f32[1,1], index: 1, kind: output, shape index: {}]  }
   0x1   :  { %7 = vsyncpa [#allocation5], 0  ;;  %s18_s8 = sshll.u32 %s189_s0, 4  ;;  %s169_s9 = smov [#allocation3]   ;;  %s19_s8 = int_to_ptr.hbm [resolvable:$true] %s18_s8 }
   0x2   :  { %s20_s10 = sshll.u32 %s169_s9, 4  ;;  %s170_s11 = smov 128   ;;  %s21_s10 = int_to_ptr.vmem [resolvable:$true] %s20_s10 }
   0x3   :  { %s171_s12 = smov 8  }
   0x4   :  { %26 = dma.hbm_to_vmem [thread:$0]  %s19_s8, 256, %s21_s10, [#allocation4], %s170_s11, %s170_s11, %s171_s12  }
   0x5   :  { %165 = dma.done.wait [#allocation4], 256  }
   0x6   :  { %166 = vsyncadd [#allocation4], 4294967040  ;;  %v42_v0 = vld [vmem:[#allocation3] sm:$0xff]  ;;  %v43_v1 = vld [vmem:[#allocation3 + $0x8] sm:$0xff]  ;;  %v62_v8 = vlaneseq  ;;  %s102_s14 = sshll.u32 %s190_s1, 4  ;;  %s172_s16 = smov [#allocation6]   ;;  %s103_s14 = int_to_ptr.hbm [resolvable:$true] %s102_s14 }
   0x7   :  { %v46_v2 = vand.u32 2147483647, %v42_v0  ;;  %v47_v3 = vand.u32 2147483647, %v43_v1  ;;  %v44_v19 = vmax.f32 %v42_v0, 0.0  ;;  %v45_v22 = vmax.f32 %v43_v1, 0.0 }
   0x8   :  { %v63_v9 = vshrl.u32 %v62_v8, 7  ;;  %v66_v15 = vand.u32 127, %v62_v8 }
   0x9   :  { %v48_v4 = vsub.f32 0.0, %v46_v2  ;;  %v49_v5 = vsub.f32 0.0, %v47_v3 }
   0xa   :  { %v64_v11 = vadd.s32 8, %v63_v9  ;;  %v70_v16 = vmul.u32 128, %v63_v9 }
   0xb   :  { %v50_v6 = vmul.f32 1.442695, %v48_v4  ;;  %v52_v7 = vmul.f32 1.442695, %v49_v5 }
   0xc   :  { %v71_v17 = vmul.u32 128, %v64_v11  ;;  %v72_v18 = vadd.s32 %v70_v16, %v66_v15 }
   0xd   :  { %121 = vpow2.f32 %v50_v6 }
   0xe   :  { %123 = vpow2.f32 %v52_v7  ;;  %v73_v20 = vadd.s32 %v71_v17, %v66_v15  ;;  %vm74_vm0 = vcmp.lt.s32.totalorder %v72_v18, 2048 }
  0x10   :  { %vm75_vm1 = vcmp.lt.s32.totalorder %v73_v20, 2048 }
  0x13   :  { %v122_v10 = vpop.eup %121 }
  0x14   :  { %v124_v12 = vpop.eup %123  ;;  %v54_v13 = vadd.f32 1.0, %v122_v10 }
  0x15   :  { %v55_v14 = vadd.f32 1.0, %v124_v12 }
  0x16   :  { %125 = vlog2.f32 %v54_v13 }
  0x17   :  { %127 = vlog2.f32 %v55_v14 }
  0x1c   :  { %v126_v21 = vpop.eup %125 }
  0x1d   :  { %v128_v23 = vpop.eup %127  ;;  %v57_v24 = vmul.f32 0.6931472, %v126_v21 }
  0x1e   :  { %v59_v25 = vmul.f32 0.6931472, %v128_v23 }
  0x1f   :  { %v60_v26 = vadd.f32 %v57_v24, %v44_v19 }
  0x20   :  { %v61_v27 = vadd.f32 %v59_v25, %v45_v22 }
  0x21   :  { %v76_v28 = vsel %vm74_vm0, %v60_v26, 0.0 }
  0x22   :  { %v77_v29 = vsel %vm75_vm1, %v61_v27, 0.0 }
  0x23   :  { %v79_v30 = vadd.f32 %v77_v29, %v76_v28 }
  0x25   :  { %86 = vadd.xlane.f32.xlu0 %v79_v30 }
  0x98   :  { %v87_v31 = vpop.xlane.xlu0 %86 }
  0x99   :  { %v88_v32 = vrot.slane %v87_v31, 4 }
  0x9b   :  { %v89_v33 = vadd.f32 %v88_v32, %v87_v31 }
  0x9d   :  { %v90_v34 = vrot.slane %v89_v33, 2 }
  0x9f   :  { %v91_v35 = vadd.f32 %v90_v34, %v89_v33 }
  0xa1   :  { %v92_v36 = vrot.slane %v91_v35, 1 }
  0xa3   :  { %v93_v37 = vadd.f32 %v92_v36, %v91_v35 }
  0xa5   :  { %115 = vpush %v93_v37 }
  0xd6   :  { %s116_s15 = spop %115 }
  0xd7   :  { %96 = sst [smem:[#allocation6]] %s116_s15 }
  0xd8   :  { %105 = dma.smem_to_hbm %s172_s16, 16, %s103_s14, [#allocation5]  }
  0xd9   :  { %167 = dma.done.wait [#allocation5], 16  }
  0xda   :  { %168 = vsyncadd [#allocation5], 4294967280 }
  0xdb   :  { %110 = sfence }
  0xdc   :  { %111 = vsyncpa [#allocation4], 1 }
  0xdd   :  { %112 = vsyncpa [#allocation5], 1 }

</bundles_post_ra>
